<compile_context>
chip_gen: v7x
topology: tpu7x:2x2x1
jax: 0.10.0
libtpu: 0.0.40
codegen_flags: <defaults>
</compile_context>

<pallas_src>
import functools

import jax
import jax.numpy as jnp
from jax.experimental import pallas as pl
from jax.experimental.pallas import tpu as pltpu


# ---------------------------------------------------------------------------
# Kernel
# ---------------------------------------------------------------------------
def attn_bow_kernel(art_ref, ctxflat_ref, wctx_ref, bctx_ref,
                    wm_ref, bm_ref, out_ref, attn_ref):
    # art_ref:     (TB, S, D)   bf16  article embeddings for this batch tile
    # ctxflat_ref: (TB, W*D)    bf16  flattened title-context embeddings
    # wctx_ref:    (W*D, D)     bf16  context_linear.weight, pre-transposed
    # bctx_ref:    (1, D)       f32   context_linear.bias
    # wm_ref:      (D, D)       bf16  mout_linear.weight, pre-transposed
    # bm_ref:      (1, D)       f32   mout_linear.bias
    # out_ref:     (TB, D)      f32
    # attn_ref:    (TB, S)      f32

    # context_linear: (TB, W*D) @ (W*D, D) + (1, D) -> (TB, D), f32 accumulate.
    ctx = jnp.dot(ctxflat_ref[...], wctx_ref[...],
                  preferred_element_type=jnp.float32) + bctx_ref[...]

    # Attention logits: contract D on the lane axis without transposing art.
    # logits[b, s] = sum_d art[b, s, d] * ctx[b, d]     (VPU mul + lane reduce)
    art = art_ref[...].astype(jnp.float32)                    # (TB, S, D)
    logits = jnp.sum(art * ctx[:, None, :], axis=-1)          # (TB, S)

    # Softmax over the sequence axis (PyTorch legacy nn.Softmax() -> dim=1),
    # kept entirely in f32.
    mx = jnp.max(logits, axis=-1, keepdims=True)
    e = jnp.exp(logits - mx)
    attn = e / jnp.sum(e, axis=-1, keepdims=True)             # (TB, S)

    # Weighted bag-of-words: m[b, d] = sum_s art[b, s, d] * attn[b, s]
    mvec = jnp.sum(art * attn[:, :, None], axis=1)            # (TB, D), f32

    # mout_linear: (TB, D) @ (D, D) + (1, D), bf16 MXU inputs, f32 accumulate.
    out = jnp.dot(mvec.astype(jnp.bfloat16), wm_ref[...],
                  preferred_element_type=jnp.float32) + bm_ref[...]

    out_ref[...] = out
    attn_ref[...] = attn


# ---------------------------------------------------------------------------
# pallas_call wrapper
# ---------------------------------------------------------------------------
def _pick_block_b(batch, seq, dim, wdim, vmem_budget_bytes=24 * 1024 * 1024):
    """Pick a batch-tile size TB (multiple of 8) that fits double-buffered."""
    per_row_io = ((seq * dim + wdim) * 2 + (dim + seq) * 4) * 2   # bf16 in, f32 out, x2 buf
    per_row_scratch = seq * dim * 4 * 2                           # f32 art copy + temps
    per_row = per_row_io + per_row_scratch
    tb_cap = max(8, vmem_budget_bytes // max(per_row, 1))
    # Prefer MXU-friendly tiles while keeping >= 2 grid steps (v7x: 2 TCs).
    for cand in (512, 256, 128):
        if tb_cap >= cand and batch >= 2 * cand:
            return cand
    tb = min(int(tb_cap), ((batch + 7) // 8) * 8)
    return max(8, (tb // 8) * 8)


@functools.partial(jax.jit, static_argnames=("block_b",))
def attn_bow_pallas(art_emb, ctx_flat, w_ctx_t, b_ctx, w_m_t, b_m,
                    block_b=None):
    B, S, D = art_emb.shape
    WD = ctx_flat.shape[-1]
    if block_b is None:
        block_b = _pick_block_b(B, S, D, WD)

    # Pad the batch to a multiple of the tile (padded rows are zeros; they
    # produce finite garbage that is sliced off below).
    b_pad = pl.cdiv(B, block_b) * block_b
    if b_pad != B:
        art_emb = jnp.pad(art_emb, ((0, b_pad - B), (0, 0), (0, 0)))
        ctx_flat = jnp.pad(ctx_flat, ((0, b_pad - B), (0, 0)))

    grid = (b_pad // block_b,)
    out, attn = pl.pallas_call(
        attn_bow_kernel,
        out_shape=(jax.ShapeDtypeStruct((b_pad, D), jnp.float32),
                   jax.ShapeDtypeStruct((b_pad, S), jnp.float32)),
        grid_spec=pltpu.PrefetchScalarGridSpec(
            num_scalar_prefetch=0,
            grid=grid,
            in_specs=[
                pl.BlockSpec((block_b, S, D), lambda b: (b, 0, 0)),   # article emb
                pl.BlockSpec((block_b, WD), lambda b: (b, 0)),        # ctx flat
                pl.BlockSpec((WD, D), lambda b: (0, 0)),              # ctx weight^T
                pl.BlockSpec((1, D), lambda b: (0, 0)),               # ctx bias
                pl.BlockSpec((D, D), lambda b: (0, 0)),               # mout weight^T
                pl.BlockSpec((1, D), lambda b: (0, 0)),               # mout bias
            ],
            out_specs=[
                pl.BlockSpec((block_b, D), lambda b: (b, 0)),
                pl.BlockSpec((block_b, S), lambda b: (b, 0)),
            ],
        ),
        compiler_params=pltpu.CompilerParams(
            dimension_semantics=("parallel",),
            vmem_limit_bytes=40 * 1024 * 1024,
        ),
    )(art_emb, ctx_flat, w_ctx_t, b_ctx, w_m_t, b_m)
    return out[:B], attn[:B]


# ---------------------------------------------------------------------------
# Full forward (embedding gathers are XLA glue, hot path is Pallas)
# ---------------------------------------------------------------------------
def attn_bow_encoder(article_ids, title_ids, params):
    E_a = params["article_embedding"]        # (V, D)
    E_c = params["context_embedding"]        # (V, D)
    w_ctx = params["context_linear_w"]       # (D, W*D)
    b_ctx = params["context_linear_b"]       # (D,)
    w_m = params["mout_linear_w"]            # (D, D)
    b_m = params["mout_linear_b"]            # (D,)

    B, S = article_ids.shape
    W = title_ids.shape[1]
    D = E_a.shape[1]

    # Embedding lookups (gather) stay in plain JAX; activations go bf16.
    # TODO(synk): fuse the article-embedding gather into the kernel via
    # scalar-prefetched ids + manual DMA from E_a (memory_space=pl.ANY) to
    # drop a full HBM write+read of the (B, S, D) tensor.
    art_emb = jnp.take(E_a, article_ids, axis=0).astype(jnp.bfloat16)        # (B,S,D)
    ctx_flat = jnp.take(E_c, title_ids, axis=0).reshape(B, W * D)
    ctx_flat = ctx_flat.astype(jnp.bfloat16)                                 # (B,W*D)

    # Pre-transpose + bf16-cast the constant weights once, outside the kernel.
    w_ctx_t = jnp.transpose(w_ctx).astype(jnp.bfloat16)                      # (W*D,D)
    w_m_t = jnp.transpose(w_m).astype(jnp.bfloat16)                          # (D,D)

    out, attn = attn_bow_pallas(
        art_emb, ctx_flat, w_ctx_t,
        b_ctx.reshape(1, D).astype(jnp.float32),
        w_m_t,
        b_m.reshape(1, D).astype(jnp.float32))

    # Match PyTorch return shapes: out (B, D), attention (B, S, 1).
    return out, attn.reshape(B, S, 1)

    # TODO(synk): the opt.pooling branch (ZeroPad2d + AvgPool2d over the seq
    # axis) is not implemented; it is also broken in the source (float pad).


# ---------------------------------------------------------------------------
# Pure-JAX reference (mirrors the kernel's bf16-input / f32-accumulate math)
# ---------------------------------------------------------------------------
def attn_bow_reference(article_ids, title_ids, params):
    E_a, E_c = params["article_embedding"], params["context_embedding"]
    w_ctx, b_ctx = params["context_linear_w"], params["context_linear_b"]
    w_m, b_m = params["mout_linear_w"], params["mout_linear_b"]
    B, S = article_ids.shape
    W = title_ids.shape[1]
    D = E_a.shape[1]

    art = jnp.take(E_a, article_ids, axis=0).astype(jnp.bfloat16)
    art = art.astype(jnp.float32)                                            # (B,S,D)
    ctxf = jnp.take(E_c, title_ids, axis=0).reshape(B, W * D)
    ctxf = ctxf.astype(jnp.bfloat16)

    ctx = jnp.dot(ctxf, w_ctx.T.astype(jnp.bfloat16),
                  preferred_element_type=jnp.float32) + b_ctx                # (B,D)
    logits = jnp.sum(art * ctx[:, None, :], axis=-1)                         # (B,S)
    attn = jax.nn.softmax(logits, axis=1)
    m = jnp.sum(art * attn[:, :, None], axis=1)                              # (B,D)
    out = jnp.dot(m.astype(jnp.bfloat16), w_m.T.astype(jnp.bfloat16),
                  preferred_element_type=jnp.float32) + b_m
    return out, attn.reshape(B, S, 1)


if __name__ == "__main__":
    # Small shapes consistent with the module.
    batch = 2
    seq = 8           # article length S
    window = 4        # title context window W
    bow_dim = 32      # D
    vocab = 32        # V

    key = jax.random.PRNGKey(0)
    k = jax.random.split(key, 8)

    params = {
        "article_embedding": jax.random.normal(k[0], (vocab, bow_dim), jnp.float32),
        "context_embedding": jax.random.normal(k[1], (vocab, bow_dim), jnp.float32),
        "context_linear_w": jax.random.normal(k[2], (bow_dim, window * bow_dim),
                                              jnp.float32) * 0.1,
        "context_linear_b": jax.random.normal(k[3], (bow_dim,), jnp.float32) * 0.1,
        "mout_linear_w": jax.random.normal(k[4], (bow_dim, bow_dim),
                                           jnp.float32) * 0.1,
        "mout_linear_b": jax.random.normal(k[5], (bow_dim,), jnp.float32) * 0.1,
    }

    article_ids = jax.random.randint(k[6], (batch, seq), 0, vocab, jnp.int32)
    title_ids = jax.random.randint(k[7], (batch, window), 0, vocab, jnp.int32)

    out, attn = attn_bow_encoder(article_ids, title_ids, params)
    out = jax.block_until_ready(out)
    attn = jax.block_until_ready(attn)

    out_ref, attn_ref = attn_bow_reference(article_ids, title_ids, params)
    assert out.shape == (batch, bow_dim)
    assert attn.shape == (batch, seq, 1)
    assert bool(jnp.allclose(out, out_ref, atol=1e-3, rtol=1e-3)), \
        f"out mismatch: max abs diff {jnp.max(jnp.abs(out - out_ref))}"
    assert bool(jnp.allclose(attn, attn_ref, atol=1e-3, rtol=1e-3)), \
        f"attn mismatch: max abs diff {jnp.max(jnp.abs(attn - attn_ref))}"

    print("KERNEL_OK")
</pallas_src>

<mosaic_0001>
module attributes {stable_mosaic.version = 11 : i64} {
  func.func @attn_bow_kernel(%arg0: i32, %arg1: memref<8x8x32xbf16, #tpu.memory_space<vmem>>, %arg2: memref<8x128xbf16, #tpu.memory_space<vmem>>, %arg3: memref<128x32xbf16, #tpu.memory_space<vmem>>, %arg4: memref<1x32xf32, #tpu.memory_space<vmem>>, %arg5: memref<32x32xbf16, #tpu.memory_space<vmem>>, %arg6: memref<1x32xf32, #tpu.memory_space<vmem>>, %arg7: memref<8x32xf32, #tpu.memory_space<vmem>>, %arg8: memref<8x8xf32, #tpu.memory_space<vmem>>) attributes {dimension_semantics = [#tpu.dimension_semantics<parallel>], iteration_bounds = array<i64: 1>, scalar_prefetch = 0 : i64, scratch_operands = 0 : i64, tpu.core_type = #tpu.core_type<tc>, window_params = [{transform_indices = @transform_0, window_bounds = array<i64: 8, 8, 32>}, {transform_indices = @transform_1, window_bounds = array<i64: 8, 128>}, {pipeline_mode = #tpu.pipeline_mode<synchronous>, transform_indices = @transform_2, window_bounds = array<i64: 128, 32>}, {pipeline_mode = #tpu.pipeline_mode<synchronous>, transform_indices = @transform_3, window_bounds = array<i64: 1, 32>}, {pipeline_mode = #tpu.pipeline_mode<synchronous>, transform_indices = @transform_4, window_bounds = array<i64: 32, 32>}, {pipeline_mode = #tpu.pipeline_mode<synchronous>, transform_indices = @transform_5, window_bounds = array<i64: 1, 32>}, {transform_indices = @transform_6, window_bounds = array<i64: 8, 32>}, {transform_indices = @transform_7, window_bounds = array<i64: 8, 8>}]} {
    %c0 = arith.constant 0 : index
    %c0_0 = arith.constant 0 : index
    %0 = vector.load %arg2[%c0, %c0_0] : memref<8x128xbf16, #tpu.memory_space<vmem>>, vector<8x128xbf16>
    %c0_1 = arith.constant 0 : index
    %c0_2 = arith.constant 0 : index
    %1 = vector.load %arg3[%c0_1, %c0_2] : memref<128x32xbf16, #tpu.memory_space<vmem>>, vector<128x32xbf16>
    %cst = arith.constant dense<0.000000e+00> : vector<8x32xf32>
    %2 = tpu.matmul %0, %1, %cst {dimension_numbers = #tpu.dot_dimension_numbers<[1], [0], [0], [1], [0, 0, 1, 1], [], []>} : vector<8x128xbf16>, vector<128x32xbf16>, vector<8x32xf32> -> vector<8x32xf32>
    %c0_3 = arith.constant 0 : index
    %c0_4 = arith.constant 0 : index
    %3 = vector.load %arg4[%c0_3, %c0_4] : memref<1x32xf32, #tpu.memory_space<vmem>>, vector<1x32xf32>
    %4 = vector.broadcast %3 : vector<1x32xf32> to vector<8x32xf32>
    %5 = arith.addf %2, %4 : vector<8x32xf32>
    %c0_5 = arith.constant 0 : index
    %c0_6 = arith.constant 0 : index
    %c0_7 = arith.constant 0 : index
    %6 = vector.load %arg1[%c0_5, %c0_6, %c0_7] : memref<8x8x32xbf16, #tpu.memory_space<vmem>>, vector<8x8x32xbf16>
    %7 = arith.extf %6 : vector<8x8x32xbf16> to vector<8x8x32xf32>
    %8 = vector.shape_cast %5 : vector<8x32xf32> to vector<8x1x32xf32>
    %9 = vector.broadcast %8 : vector<8x1x32xf32> to vector<8x8x32xf32>
    %10 = arith.mulf %7, %9 : vector<8x8x32xf32>
    %cst_8 = arith.constant dense<0.000000e+00> : vector<8x8xf32>
    %11 = vector.multi_reduction <add>, %10, %cst_8 [2] : vector<8x8x32xf32> to vector<8x8xf32>
    %cst_9 = arith.constant dense<0xFF800000> : vector<8xf32>
    %12 = vector.multi_reduction <maximumf>, %11, %cst_9 [1] : vector<8x8xf32> to vector<8xf32>
    %13 = vector.shape_cast %12 : vector<8xf32> to vector<8x1xf32>
    %14 = vector.broadcast %13 : vector<8x1xf32> to vector<8x8xf32>
    %15 = arith.subf %11, %14 : vector<8x8xf32>
    %16 = math.exp %15 : vector<8x8xf32>
    %cst_10 = arith.constant dense<0.000000e+00> : vector<8xf32>
    %17 = vector.multi_reduction <add>, %16, %cst_10 [1] : vector<8x8xf32> to vector<8xf32>
    %18 = vector.shape_cast %17 : vector<8xf32> to vector<8x1xf32>
    %19 = vector.broadcast %18 : vector<8x1xf32> to vector<8x8xf32>
    %20 = arith.divf %16, %19 : vector<8x8xf32>
    %21 = vector.shape_cast %20 : vector<8x8xf32> to vector<8x8x1xf32>
    %22 = vector.broadcast %21 : vector<8x8x1xf32> to vector<8x8x32xf32>
    %23 = arith.mulf %7, %22 : vector<8x8x32xf32>
    %cst_11 = arith.constant dense<0.000000e+00> : vector<8x32xf32>
    %24 = vector.multi_reduction <add>, %23, %cst_11 [1] : vector<8x8x32xf32> to vector<8x32xf32>
    %25 = arith.truncf %24 : vector<8x32xf32> to vector<8x32xbf16>
    %c0_12 = arith.constant 0 : index
    %c0_13 = arith.constant 0 : index
    %26 = vector.load %arg5[%c0_12, %c0_13] : memref<32x32xbf16, #tpu.memory_space<vmem>>, vector<32x32xbf16>
    %cst_14 = arith.constant dense<0.000000e+00> : vector<8x32xf32>
    %27 = tpu.matmul %25, %26, %cst_14 {dimension_numbers = #tpu.dot_dimension_numbers<[1], [0], [0], [1], [0, 0, 1, 1], [], []>} : vector<8x32xbf16>, vector<32x32xbf16>, vector<8x32xf32> -> vector<8x32xf32>
    %c0_15 = arith.constant 0 : index
    %c0_16 = arith.constant 0 : index
    %28 = vector.load %arg6[%c0_15, %c0_16] : memref<1x32xf32, #tpu.memory_space<vmem>>, vector<1x32xf32>
    %29 = vector.broadcast %28 : vector<1x32xf32> to vector<8x32xf32>
    %30 = arith.addf %27, %29 : vector<8x32xf32>
    %c0_17 = arith.constant 0 : index
    %c0_18 = arith.constant 0 : index
    %31 = vector.load %arg7[%c0_17, %c0_18] : memref<8x32xf32, #tpu.memory_space<vmem>>, vector<8x32xf32>
    tpu.vector_store %arg7[%c0_17, %c0_18], %30 {strides = array<i32>} : memref<8x32xf32, #tpu.memory_space<vmem>>, vector<8x32xf32>,
    %c0_19 = arith.constant 0 : index
    %c0_20 = arith.constant 0 : index
    %32 = vector.load %arg8[%c0_19, %c0_20] : memref<8x8xf32, #tpu.memory_space<vmem>>, vector<8x8xf32>
    tpu.vector_store %arg8[%c0_19, %c0_20], %20 {strides = array<i32>} : memref<8x8xf32, #tpu.memory_space<vmem>>, vector<8x8xf32>,
    return
  }
  func.func @transform_0(%arg0: i32) -> (i32, i32, i32) {
    %c0_i32 = arith.constant 0 : i32
    %c0_i32_0 = arith.constant 0 : i32
    %c0_i32_1 = arith.constant 0 : i32
    return %arg0, %c0_i32, %c0_i32_0 : i32, i32, i32
  }
  func.func @transform_1(%arg0: i32) -> (i32, i32) {
    %c0_i32 = arith.constant 0 : i32
    %c0_i32_0 = arith.constant 0 : i32
    return %arg0, %c0_i32 : i32, i32
  }
  func.func @transform_2(%arg0: i32) -> (i32, i32) {
    %c0_i32 = arith.constant 0 : i32
    %c0_i32_0 = arith.constant 0 : i32
    %c0_i32_1 = arith.constant 0 : i32
    return %c0_i32, %c0_i32_0 : i32, i32
  }
  func.func @transform_3(%arg0: i32) -> (i32, i32) {
    %c0_i32 = arith.constant 0 : i32
    %c0_i32_0 = arith.constant 0 : i32
    %c0_i32_1 = arith.constant 0 : i32
    return %c0_i32, %c0_i32_0 : i32, i32
  }
  func.func @transform_4(%arg0: i32) -> (i32, i32) {
    %c0_i32 = arith.constant 0 : i32
    %c0_i32_0 = arith.constant 0 : i32
    %c0_i32_1 = arith.constant 0 : i32
    return %c0_i32, %c0_i32_0 : i32, i32
  }
  func.func @transform_5(%arg0: i32) -> (i32, i32) {
    %c0_i32 = arith.constant 0 : i32
    %c0_i32_0 = arith.constant 0 : i32
    %c0_i32_1 = arith.constant 0 : i32
    return %c0_i32, %c0_i32_0 : i32, i32
  }
  func.func @transform_6(%arg0: i32) -> (i32, i32) {
    %c0_i32 = arith.constant 0 : i32
    %c0_i32_0 = arith.constant 0 : i32
    return %arg0, %c0_i32 : i32, i32
  }
  func.func @transform_7(%arg0: i32) -> (i32, i32) {
    %c0_i32 = arith.constant 0 : i32
    %c0_i32_0 = arith.constant 0 : i32
    return %arg0, %c0_i32 : i32, i32
  }
}

</mosaic_0001>

<bundles_post_ra>
// kernel: attn_bow_pallas.1
= control target key start
LH: loop header
LB: loop body
LE: loop exit
PB: predicated region body
PF: predicated region fallthrough
CT: control target
= control target key end

     0   :  { %v907_v0 = vmov 0.0   ;;  %vm908_vm0 = vmmov 0   ;;  %v909_v10 = vmov 1966171168   ;;  %v159_v12 = vlaneseq  ;;  %s1225_s2 = inlined_call_operand.vmem [shape: bf16[128,32], index: 2, kind: input, shape index: {}]   ;;  %s1226_s1 = inlined_call_operand.vmem [shape: bf16[8,128], index: 1, kind: input, shape index: {}]   ;;  %s1227_s3 = inlined_call_operand.vmem [shape: f32[1,32], index: 3, kind: input, shape index: {}]   ;;  %s1228_s0 = inlined_call_operand.vmem [shape: bf16[8,8,32], index: 0, kind: input, shape index: {}]   ;;  %s1229_s4 = inlined_call_operand.vmem [shape: bf16[32,32], index: 4, kind: input, shape index: {}]   ;;  %s1230_s7 = inlined_call_operand.vmem [shape: f32[8,8], index: 7, kind: output, shape index: {1}]   ;;  %s1231_s5 = inlined_call_operand.vmem [shape: f32[1,32], index: 5, kind: input, shape index: {}]   ;;  %s1232_s6 = inlined_call_operand.vmem [shape: f32[8,32], index: 6, kind: output, shape index: {0}]  }
   0x1   :  { %831 = vmatprep.subr.bf16.mxu0 %v907_v0  ;;  %v865_v1 = vld [vmem:[%s1225_s2] sm:$0xff]   ;;  %847 = vmatprep.mubr.msk.bf16.mxu0 %vm908_vm0, %v907_v0  ;;  %v866_v2 = vld [vmem:[%s1225_s2 + $0x8] sm:$0xff]   ;;  %v867_v3 = vld [vmem:[%s1225_s2 + $0x10] sm:$0xff]   ;;  %v157_v11 = vunpack.c.l.s4 %v909_v10  ;;  %vm252_vm1 = vcmask 261120   ;;  %vm319_vm2 = vcmask 1041409   ;;  %vm321_vm3 = vcmask 1042434  }
   0x2   :  { %851 = vmatprep.subr.bf16.mxu1 %v907_v0  ;;  %855 = vmatprep.mubr.msk.bf16.mxu1 %vm908_vm0, %v907_v0  ;;  %v868_v4 = vld [vmem:[%s1225_s2 + $0x18] sm:$0xff]   ;;  %v869_v5 = vld [vmem:[%s1225_s2 + $0x20] sm:$0xff]   ;;  %v870_v6 = vld [vmem:[%s1225_s2 + $0x28] sm:$0xff]   ;;  %v990_v14 = vshrl.u32 %v159_v12, 7  ;;  %vm323_vm4 = vcmask 1043459   ;;  %vm325_vm5 = vcmask 1044484  }
   0x3   :  { %832 = vmatpush3.bf16.msra.mxu0 %v865_v1  ;;  %v871_v7 = vld [vmem:[%s1225_s2 + $0x30] sm:$0xff]   ;;  %v872_v8 = vld [vmem:[%s1225_s2 + $0x38] sm:$0xff]   ;;  %v26_v9 = vld [vmem:[%s1226_s1] sm:$0xf]  ;;  %v158_v13 = vunpack.c.0.s8 %v157_v11  ;;  %vm327_vm6 = vcmask 1045509   ;;  %vm329_vm7 = vcmask 1046534  }
   0x4   :  { %833 = vmatprep.subr.bf16.mxu0 %v907_v0  ;;  %v787_v15 = vld [vmem:[%s1227_s3] ss:$0 sm:$0xff]  ;;  %v1002_v25 = vsub.s32 0, %v990_v14  ;;  %v1007_v26 = vld [vmem:[%s1228_s0 + $0x8] sm:$0xff]   ;;  %v1016_v37 = vld [vmem:[%s1228_s0 + $0x10] sm:$0xff]   ;;  %vm331_vm8 = vcmask 1047559  }
   0x5   :  { %v161_v16 = vsub.s32 %v158_v13, %v990_v14  ;;  %v999_v21 = vld [vmem:[%s1228_s0] sm:$0xff]   ;;  %v806_v31 = vunpack.c.l.bf16 %v1007_v26  ;;  %v807_v38 = vunpack.c.h.bf16 %v1007_v26  ;;  %v810_v44 = vunpack.c.l.bf16 %v1016_v37  ;;  %v1035_v53 = vld [vmem:[%s1228_s0 + $0x18] sm:$0xff]  }
   0x6   :  { %v802_v30 = vunpack.c.l.bf16 %v999_v21  ;;  %v803_v32 = vunpack.c.h.bf16 %v999_v21  ;;  %v811_v52 = vunpack.c.h.bf16 %v1016_v37  ;;  %v814_v60 = vunpack.c.l.bf16 %v1035_v53 }
   0x7   :  { %834 = vmatpush3.bf16.msra.mxu0 %v866_v2  ;;  %v815_v1 = vunpack.c.h.bf16 %v1035_v53  ;;  %vm334_vm9 = vcmask 64512  }
   0x8   :  { %835 = vmatprep.subr.bf16.mxu0 %v907_v0 }
   0xb   :  { %836 = vmatpush3.bf16.msra.mxu0 %v867_v3 }
   0xc   :  { %837 = vmatprep.subr.bf16.mxu0 %v907_v0 }
   0xf   :  { %838 = vmatpush3.bf16.msra.mxu0 %v868_v4 }
  0x10   :  { %839 = vmatprep.subr.bf16.mxu0 %v907_v0 }
  0x13   :  { %840 = vmatpush3.bf16.msra.mxu0 %v869_v5 }
  0x14   :  { %841 = vmatprep.subr.bf16.mxu0 %v907_v0 }
  0x17   :  { %842 = vmatpush3.bf16.msra.mxu0 %v870_v6 }
  0x18   :  { %843 = vmatprep.subr.bf16.mxu0 %v907_v0 }
  0x1b   :  { %844 = vmatpush3.bf16.msra.mxu0 %v871_v7 }
  0x1c   :  { %845 = vmatprep.subr.bf16.mxu0 %v907_v0 }
  0x1f   :  { %846 = vmatpush3.bf16.msra.mxu0 %v872_v8 }
  0x22   :  { %848 = vmatmul.mubr.bf16.vlgmr.msra.gmra.mrb[0].mxu0 %v26_v9  ;;  %v286_v9 = vand.u32 127, %v159_v12 }
  0x24   :  { %v1061_v11 = vsub.s32 %v286_v9, %v990_v14  ;;  %v369_v9 = vsub.s32 7, %v990_v14 }
  0xf5   :  { %v132_v17 = vpop.f32.mrb[0].mxu0 }
  0xf6   :  { %v133_v18 = vadd.f32 %v787_v15, %v132_v17  ;;  %v849_v19 = vpop.f32.mrb[1].mxu0 }
  0xf7   :  { %v135_v20 = vpop.f32.mrb[2].mxu0 }
  0xf8   :  { %v155_v22 = vcombine.high %v133_v18, %v133_v18  ;;  %v162_v23 = vrot.slane %v133_v18, %v161_v16  ;;  %v850_v24 = vpop.f32.mrb[3].mxu0 }
  0xfa   :  { %v169_v27 = vrot.slane %v155_v22, %v161_v16  ;;  %v170_v28 = vcombine.high %v162_v23, %v162_v23  ;;  %v178_v29 = vrot.slane %v162_v23, %v161_v16 }
  0xfc   :  { %v171_v33 = vcombine.high %v169_v27, %v169_v27  ;;  %v207_v34 = vrot.slane %v178_v29, %v1002_v25  ;;  %v200_v35 = vcombine.high %v178_v29, %v178_v29  ;;  %v192_v36 = vrot.slane %v170_v28, %v161_v16 }
  0xfd   :  { %v185_v39 = vrot.slane %v169_v27, %v161_v16 }
  0xfe   :  { %v244_v40 = vmul.f32 %v802_v30, %v207_v34  ;;  %v215_v41 = vrot.slane %v200_v35, %v1002_v25  ;;  %v211_v42 = vrot.slane %v192_v36, %v1002_v25  ;;  %v202_v43 = vcombine.high %v192_v36, %v192_v36 }
  0xff   :  { %v223_v45 = vrot.slane %v185_v39, %v1002_v25  ;;  %v199_v46 = vrot.slane %v171_v33, %v161_v16  ;;  %v201_v47 = vcombine.high %v185_v39, %v185_v39 }
 0x100   :  { %v253_v48 = vsel %vm252_vm1, %v244_v40, 0.0  ;;  %v246_v49 = vmul.f32 %v806_v31, %v215_v41  ;;  %v245_v50 = vmul.f32 %v803_v32, %v211_v42  ;;  %v219_v51 = vrot.slane %v202_v43, %v1002_v25 }
 0x101   :  { %254 = vadd.xlane.f32.xlu0 %v253_v48  ;;  %v227_v56 = vrot.slane %v199_v46, %v1002_v25  ;;  %v203_v57 = vcombine.high %v199_v46, %v199_v46  ;;  %v248_v59 = vmul.f32 %v810_v44, %v223_v45  ;;  %v231_v61 = vrot.slane %v201_v47, %v1002_v25 }
 0x102   :  { %v259_v54 = vsel %vm252_vm1, %v246_v49, 0.0  ;;  %v247_v55 = vmul.f32 %v807_v38, %v219_v51  ;;  %v256_v58 = vsel %vm252_vm1, %v245_v50, 0.0  ;;  %v910_v45 = vmov 0  }
 0x103   :  { %260 = vadd.xlane.f32.xlu1 %v259_v54  ;;  %v249_v63 = vmul.f32 %v811_v52, %v227_v56  ;;  %v235_v2 = vrot.slane %v203_v57, %v1002_v25  ;;  %v265_v3 = vsel %vm252_vm1, %v248_v59, 0.0  ;;  %v250_v4 = vmul.f32 %v814_v60, %v231_v61  ;;  %864 = vset.pattern.permute.xlu0 %v910_v45 }
 0x104   :  { %v262_v62 = vsel %vm252_vm1, %v247_v55, 0.0  ;;  %863 = vset.pattern.permute.xlu1 %v910_v45  ;;  %v345_v46 = vsub.s32 1, %v990_v14  ;;  %v349_v47 = vsub.s32 2, %v990_v14  ;;  %v353_v48 = vsub.s32 3, %v990_v14 }
 0x105   :  { %257 = vadd.xlane.f32.xlu0 %v256_v58  ;;  %v268_v5 = vsel %vm252_vm1, %v249_v63, 0.0  ;;  %v251_v6 = vmul.f32 %v815_v1, %v235_v2  ;;  %v271_v7 = vsel %vm252_vm1, %v250_v4, 0.0  ;;  %v357_v55 = vsub.s32 4, %v990_v14 }
 0x106   :  { %v361_v63 = vsub.s32 5, %v990_v14 }
 0x107   :  { %263 = vadd.xlane.f32.xlu1 %v262_v62  ;;  %v274_v8 = vsel %vm252_vm1, %v251_v6, 0.0 }
 0x109   :  { %266 = vadd.xlane.f32.xlu0 %v265_v3 }
 0x10b   :  { %269 = vadd.xlane.f32.xlu1 %v268_v5  ;;  %v365_v5 = vsub.s32 6, %v990_v14 }
 0x10d   :  { %272 = vadd.xlane.f32.xlu0 %v271_v7 }
 0x10f   :  { %275 = vadd.xlane.f32.xlu1 %v274_v8 }
 0x18e   :  { %v255_v10 = vpop.xlane.xlu0 %254 }
 0x18f   :  { %v290_v16 = vrot.slane %v255_v10, %v1061_v11 }
 0x190   :  { %v261_v13 = vpop.xlane.xlu1 %260 }
 0x191   :  { %v298_v18 = vrot.slane %v261_v13, %v1061_v11 }
 0x192   :  { %v258_v15 = vpop.xlane.xlu0 %257 }
 0x193   :  { %v294_v17 = vrot.slane %v258_v15, %v1061_v11 }
 0x194   :  { %v264_v19 = vpop.xlane.xlu1 %263 }
 0x195   :  { %v320_v20 = vsel %vm319_vm2, %v294_v17, %v290_v16  ;;  %v302_v12 = vrot.slane %v264_v19, %v1061_v11 }
 0x196   :  { %v322_v22 = vsel %vm321_vm3, %v298_v18, %v320_v20  ;;  %v267_v23 = vpop.xlane.xlu0 %266 }
 0x197   :  { %v324_v24 = vsel %vm323_vm4, %v302_v12, %v322_v22  ;;  %v306_v27 = vrot.slane %v267_v23, %v1061_v11 }
 0x198   :  { %v270_v28 = vpop.xlane.xlu1 %269 }
 0x199   :  { %v326_v29 = vsel %vm325_vm5, %v306_v27, %v324_v24  ;;  %v310_v33 = vrot.slane %v270_v28, %v1061_v11 }
 0x19a   :  { %v273_v34 = vpop.xlane.xlu0 %272 }
 0x19b   :  { %v314_v35 = vrot.slane %v273_v34, %v1061_v11  ;;  %v328_v36 = vsel %vm327_vm6, %v310_v33, %v326_v29 }
 0x19c   :  { %v276_v39 = vpop.xlane.xlu1 %275 }
 0x19d   :  { %v318_v40 = vrot.slane %v276_v39, %v1061_v11  ;;  %v330_v41 = vsel %vm329_vm7, %v314_v35, %v328_v36 }
 0x19f   :  { %v332_v42 = vsel %vm331_vm8, %v318_v40, %v330_v41 }
 0x1a0   :  { %v335_v43 = vsel %vm334_vm9, %v332_v42, -inf }
 0x1a1   :  { %336 = vmax.xlane.f32.xlu0 %v335_v43 }
 0x22e   :  { %v337_v49 = vpop.xlane.xlu0 %336 }
 0x22f   :  { %v342_v50 = vrot.slane %v337_v49, %v1002_v25  ;;  %v346_v51 = vrot.slane %v337_v49, %v345_v46  ;;  %v350_v54 = vrot.slane %v337_v49, %v349_v47  ;;  %v354_v56 = vrot.slane %v337_v49, %v353_v48 }
 0x230   :  { %v358_v2 = vrot.slane %v337_v49, %v357_v55  ;;  %v362_v6 = vrot.slane %v337_v49, %v361_v63  ;;  %v370_v18 = vrot.slane %v337_v49, %v369_v9 }
 0x231   :  { %v379_v57 = vsub.f32 %v255_v10, %v342_v50  ;;  %v380_v58 = vsub.f32 %v258_v15, %v346_v51  ;;  %v381_v59 = vsub.f32 %v261_v13, %v350_v54  ;;  %v382_v3 = vsub.f32 %v264_v19, %v354_v56 }
 0x232   :  { %v383_v7 = vsub.f32 %v267_v23, %v358_v2  ;;  %v366_v10 = vrot.slane %v337_v49, %v365_v5  ;;  %v384_v13 = vsub.f32 %v270_v28, %v362_v6  ;;  %v386_v22 = vsub.f32 %v276_v39, %v370_v18 }
 0x233   :  { %v387_v61 = vmul.f32 1.442695, %v379_v57  ;;  %v389_v62 = vmul.f32 1.442695, %v380_v58  ;;  %v391_v4 = vmul.f32 1.442695, %v381_v59 }
 0x234   :  { %v393_v8 = vmul.f32 1.442695, %v382_v3  ;;  %v395_v15 = vmul.f32 1.442695, %v383_v7  ;;  %v385_v19 = vsub.f32 %v273_v34, %v366_v10  ;;  %v397_v20 = vmul.f32 1.442695, %v384_v13 }
 0x235   :  { %875 = vpow2.f32 %v387_v61  ;;  %v401_v27 = vmul.f32 1.442695, %v386_v22 }
 0x236   :  { %877 = vpow2.f32 %v389_v62  ;;  %v399_v23 = vmul.f32 1.442695, %v385_v19 }
 0x237   :  { %879 = vpow2.f32 %v391_v4 }
 0x238   :  { %881 = vpow2.f32 %v393_v8 }
 0x239   :  { %883 = vpow2.f32 %v395_v15 }
 0x23a   :  { %885 = vpow2.f32 %v397_v20 }
 0x23b   :  { %887 = vpow2.f32 %v399_v23 }
 0x23c   :  { %889 = vpow2.f32 %v401_v27 }
 0x23f   :  { %v876_v16 = vpop.eup %875 }
 0x240   :  { %v1099_v17 = vpop.eup %877  ;;  %412 = vperm.xlu1 %863, %v876_v16  }
 0x241   :  { %415 = vperm.xlu0 %864, %v1099_v17   ;;  %v1104_v12 = vpop.eup %879 }
 0x242   :  { %v1107_v24 = vpop.eup %881 }
 0x243   :  { %v1110_v28 = vpop.eup %883 }
 0x244   :  { %418 = vperm.xlu1 %863, %v1104_v12   ;;  %v1113_v29 = vpop.eup %885 }
 0x245   :  { %v1116_v33 = vpop.eup %887 }
 0x246   :  { %v1119_v34 = vpop.eup %889 }
 0x248   :  { %421 = vperm.xlu1 %863, %v1107_v24  }
 0x24c   :  { %424 = vperm.xlu1 %863, %v1110_v28  }
 0x250   :  { %427 = vperm.xlu1 %863, %v1113_v29  }
 0x254   :  { %430 = vperm.xlu1 %863, %v1116_v33  }
 0x258   :  { %433 = vperm.xlu1 %863, %v1119_v34  }
 0x2bf   :  { %v413_v35 = vpop.permute.xlu1 %412 }
 0x2c0   :  { %v416_v41 = vpop.permute.xlu0 %415  ;;  %v438_v45 = vrot.slane %v413_v35, %v1061_v11 }
 0x2c1   :  { %v442_v43 = vrot.slane %v416_v41, %v1061_v11 }
 0x2c3   :  { %v419_v36 = vpop.permute.xlu1 %418  ;;  %v467_v56 = vsel %vm319_vm2, %v442_v43, %v438_v45 }
 0x2c4   :  { %v446_v49 = vrot.slane %v419_v36, %v1061_v11 }
 0x2c6   :  { %v468_v58 = vsel %vm321_vm3, %v446_v49, %v467_v56 }
 0x2c7   :  { %v422_v39 = vpop.permute.xlu1 %421 }
 0x2c8   :  { %v450_v50 = vrot.slane %v422_v39, %v1061_v11 }
 0x2ca   :  { %v469_v61 = vsel %vm323_vm4, %v450_v50, %v468_v58 }
 0x2cb   :  { %v425_v40 = vpop.permute.xlu1 %424 }
 0x2cc   :  { %v454_v51 = vrot.slane %v425_v40, %v1061_v11 }
 0x2ce   :  { %v470_v62 = vsel %vm325_vm5, %v454_v51, %v469_v61 }
 0x2cf   :  { %v428_v42 = vpop.permute.xlu1 %427 }
 0x2d0   :  { %v458_v57 = vrot.slane %v428_v42, %v1061_v11 }
 0x2d2   :  { %v471_v3 = vsel %vm327_vm6, %v458_v57, %v470_v62 }
 0x2d3   :  { %v431_v54 = vpop.permute.xlu1 %430 }
 0x2d4   :  { %v462_v59 = vrot.slane %v431_v54, %v1061_v11 }
 0x2d6   :  { %v472_v6 = vsel %vm329_vm7, %v462_v59, %v471_v3 }
 0x2d7   :  { %v434_v2 = vpop.permute.xlu1 %433 }
 0x2d8   :  { %v466_v4 = vrot.slane %v434_v2, %v1061_v11 }
 0x2da   :  { %v473_v7 = vsel %vm331_vm8, %v466_v4, %v472_v6 }
 0x2db   :  { %v475_v8 = vsel %vm334_vm9, %v473_v7, 0.0 }
 0x2dc   :  { %476 = vadd.xlane.f32.xlu1 %v475_v8 }
 0x369   :  { %v477_v10 = vpop.xlane.xlu1 %476 }
 0x36a   :  { %v482_v13 = vrot.slane %v477_v10, %v1002_v25  ;;  %v486_v15 = vrot.slane %v477_v10, %v345_v46  ;;  %v490_v18 = vrot.slane %v477_v10, %v349_v47  ;;  %v494_v19 = vrot.slane %v477_v10, %v353_v48 }
 0x36b   :  { %v498_v22 = vrot.slane %v477_v10, %v357_v55  ;;  %v502_v25 = vrot.slane %v477_v10, %v361_v63  ;;  %v506_v47 = vrot.slane %v477_v10, %v365_v5  ;;  %v510_v55 = vrot.slane %v477_v10, %v369_v9  ;;  %v873_v9 = vld [vmem:[%s1229_s4] sm:$0xff]  }
 0x36c   :  { %891 = vrcp.f32 %v482_v13  ;;  %852 = vmatpush3.bf16.msra.mxu1 %v873_v9 }
 0x36d   :  { %893 = vrcp.f32 %v486_v15  ;;  %853 = vmatprep.subr.bf16.mxu1 %v907_v0 }
 0x36e   :  { %895 = vrcp.f32 %v490_v18 }
 0x36f   :  { %897 = vrcp.f32 %v494_v19 }
 0x370   :  { %899 = vrcp.f32 %v498_v22 }
 0x371   :  { %901 = vrcp.f32 %v502_v25 }
 0x372   :  { %903 = vrcp.f32 %v506_v47 }
 0x373   :  { %905 = vrcp.f32 %v510_v55 }
 0x376   :  { %v892_v20 = vpop.eup %891 }
 0x377   :  { %v520_v23 = vmul.f32 %v892_v20, %v876_v16  ;;  %v894_v27 = vpop.eup %893 }
 0x378   :  { %v522_v46 = vmul.f32 %v894_v27, %v1099_v17  ;;  %v896_v35 = vpop.eup %895 }
 0x379   :  { %537 = vperm.xlu0 %864, %v520_v23   ;;  %v524_v48 = vmul.f32 %v896_v35, %v1104_v12  ;;  %v898_v36 = vpop.eup %897 }
 0x37a   :  { %v526_v16 = vmul.f32 %v898_v36, %v1107_v24  ;;  %v900_v39 = vpop.eup %899  ;;  %v874_v24 = vld [vmem:[%s1229_s4 + $0x8] sm:$0xff]  }
 0x37b   :  { %v528_v63 = vmul.f32 %v900_v39, %v1110_v28  ;;  %v902_v17 = vpop.eup %901  ;;  %854 = vmatpush3.bf16.msra.mxu1 %v874_v24 }
 0x37c   :  { %v530_v40 = vmul.f32 %v902_v17, %v1113_v29  ;;  %v904_v5 = vpop.eup %903 }
 0x37d   :  { %542 = vperm.xlu0 %864, %v522_v46   ;;  %v532_v12 = vmul.f32 %v904_v5, %v1116_v33  ;;  %v906_v41 = vpop.eup %905 }
 0x37e   :  { %v534_v14 = vmul.f32 %v906_v41, %v1119_v34 }
 0x381   :  { %547 = vperm.xlu0 %864, %v524_v48  }
 0x385   :  { %552 = vperm.xlu0 %864, %v526_v16  }
 0x389   :  { %557 = vperm.xlu0 %864, %v528_v63  }
 0x38d   :  { %562 = vperm.xlu0 %864, %v530_v40  }
 0x391   :  { %567 = vperm.xlu0 %864, %v532_v12  }
 0x395   :  { %572 = vperm.xlu0 %864, %v534_v14  }
 0x3f8   :  { %v538_v28 = vpop.permute.xlu0 %537 }
 0x3f9   :  { %v575_v33 = vmul.f32 %v802_v30, %v538_v28  ;;  %v741_v10 = vrot.slane %v538_v28, %v1061_v11 }
 0x3fb   :  { %v583_v45 = vsel %vm252_vm1, %v575_v33, 0.0 }
 0x3fc   :  { %v543_v29 = vpop.permute.xlu0 %542  ;;  %v584_v51 = vrot.slane %v583_v45, 4 }
 0x3fd   :  { %v576_v34 = vmul.f32 %v803_v32, %v543_v29  ;;  %v745_v3 = vrot.slane %v543_v29, %v1061_v11 }
 0x3fe   :  { %v585_v58 = vadd.f32 %v584_v51, %v583_v45 }
 0x3ff   :  { %v590_v42 = vsel %vm252_vm1, %v576_v34, 0.0  ;;  %v770_v20 = vsel %vm319_vm2, %v745_v3, %v741_v10 }
 0x400   :  { %v548_v43 = vpop.permute.xlu0 %547  ;;  %v591_v50 = vrot.slane %v590_v42, 4  ;;  %v586_v7 = vrot.slane %v585_v58, 2 }
 0x401   :  { %v577_v49 = vmul.f32 %v806_v31, %v548_v43  ;;  %v749_v13 = vrot.slane %v548_v43, %v1061_v11 }
 0x402   :  { %v592_v57 = vadd.f32 %v591_v50, %v590_v42  ;;  %v587_v25 = vadd.f32 %v586_v7, %v585_v58 }
 0x403   :  { %v597_v0 = vsel %vm252_vm1, %v577_v49, 0.0  ;;  %v771_v37 = vsel %vm321_vm3, %v749_v13, %v770_v20 }
 0x404   :  { %v598_v54 = vrot.slane %v597_v0, 4  ;;  %v553_v56 = vpop.permute.xlu0 %552  ;;  %v593_v31 = vrot.slane %v592_v57, 2  ;;  %v588_v41 = vrot.slane %v587_v25, 1 }
 0x405   :  { %v578_v30 = vmul.f32 %v807_v38, %v553_v56 }
 0x406   :  { %v599_v21 = vadd.f32 %v598_v54, %v597_v0  ;;  %v594_v18 = vadd.f32 %v593_v31, %v592_v57  ;;  %v589_v54 = vadd.f32 %v588_v41, %v587_v25 }
 0x407   :  { %v604_v32 = vsel %vm252_vm1, %v578_v30, 0.0 }
 0x408   :  { %v605_v59 = vrot.slane %v604_v32, 4  ;;  %v558_v61 = vpop.permute.xlu0 %557  ;;  %v600_v4 = vrot.slane %v599_v21, 2  ;;  %v595_v55 = vrot.slane %v594_v18, 1 }
 0x409   :  { %v579_v62 = vmul.f32 %v810_v44, %v558_v61  ;;  %v753_v44 = vrot.slane %v553_v56, %v1061_v11  ;;  %v757_v23 = vrot.slane %v558_v61, %v1061_v11  ;;  %v639_v61 = vpack.c.bf16 %v589_v54, %v589_v54 }
 0x40a   :  { %v606_v2 = vadd.f32 %v605_v59, %v604_v32  ;;  %v601_v22 = vadd.f32 %v600_v4, %v599_v21  ;;  %v596_v42 = vadd.f32 %v595_v55, %v594_v18 }
 0x40b   :  { %v611_v6 = vsel %vm252_vm1, %v579_v62, 0.0  ;;  %v772_v16 = vsel %vm323_vm4, %v753_v44, %v771_v37 }
 0x40c   :  { %v607_v26 = vrot.slane %v606_v2, 2  ;;  %v612_v38 = vrot.slane %v611_v6, 4  ;;  %v563_v8 = vpop.permute.xlu0 %562  ;;  %v602_v17 = vrot.slane %v601_v22, 1  ;;  %v773_v40 = vsel %vm325_vm5, %v757_v23, %v772_v16 }
 0x40d   :  { %v580_v15 = vmul.f32 %v811_v52, %v563_v8  ;;  %v761_v47 = vrot.slane %v563_v8, %v1061_v11  ;;  %v666_v8 = vunpack.c.l.b16 %v639_v61 }
 0x40e   :  { %v613_v19 = vadd.f32 %v612_v38, %v611_v6  ;;  %v608_v46 = vadd.f32 %v607_v26, %v606_v2  ;;  %v603_v49 = vadd.f32 %v602_v17, %v601_v22 }
 0x40f   :  { %v618_v27 = vsel %vm252_vm1, %v580_v15, 0.0  ;;  %v774_v9 = vsel %vm327_vm6, %v761_v47, %v773_v40 }
 0x410   :  { %v614_v35 = vrot.slane %v613_v19, 2  ;;  %v568_v48 = vpop.permute.xlu0 %567  ;;  %v619_v52 = vrot.slane %v618_v27, 4  ;;  %v609_v14 = vrot.slane %v608_v46, 1  ;;  %v641_v58 = vpack.c.bf16 %v603_v49, %v603_v49 }
 0x411   :  { %v581_v36 = vmul.f32 %v814_v60, %v568_v48  ;;  %v765_v63 = vrot.slane %v568_v48, %v1061_v11 }
 0x412   :  { %v615_v39 = vadd.f32 %v614_v35, %v613_v19  ;;  %v620_v5 = vadd.f32 %v619_v52, %v618_v27  ;;  %v610_v56 = vadd.f32 %v609_v14, %v608_v46  ;;  %v668_v38 = vunpack.c.l.b16 %v641_v58 }
 0x413   :  { %v625_v12 = vsel %vm252_vm1, %v581_v36, 0.0  ;;  %v775_v45 = vsel %vm329_vm7, %v765_v63, %v774_v9  ;;  %v796_v36 = vld [vmem:[%s1231_s5] ss:$0 sm:$0xff] }
 0x414   :  { %v626_v24 = vrot.slane %v625_v12, 4  ;;  %v573_v28 = vpop.permute.xlu0 %572  ;;  %v616_v29 = vrot.slane %v615_v39, 1  ;;  %v621_v60 = vrot.slane %v620_v5, 2  ;;  %v642_v62 = vpack.c.bf16 %v610_v56, %v610_v56 }
 0x415   :  { %v582_v33 = vmul.f32 %v815_v1, %v573_v28  ;;  %v769_v34 = vrot.slane %v573_v28, %v1061_v11  ;;  %v640_v11 = vpack.c.bf16 %v596_v42, %v596_v42 }
 0x416   :  { %v627_v43 = vadd.f32 %v626_v24, %v625_v12  ;;  %v622_v50 = vadd.f32 %v621_v60, %v620_v5  ;;  %v617_v53 = vadd.f32 %v616_v29, %v615_v39  ;;  %v669_v10 = vunpack.c.l.b16 %v642_v62 }
 0x417   :  { %v632_v0 = vsel %vm252_vm1, %v582_v33, 0.0  ;;  %v776_v51 = vsel %vm331_vm8, %v769_v34, %v775_v45  ;;  %v667_v4 = vunpack.c.l.b16 %v640_v11 }
 0x418   :  { %v628_v30 = vrot.slane %v627_v43, 2  ;;  %v633_v57 = vrot.slane %v632_v0, 4  ;;  %778 = vst.msk [vmem:[%s1230_s7] sm:$0xff] %vm334_vm9, %v776_v51  ;;  %v623_v1 = vrot.slane %v622_v50, 1  ;;  %v643_v3 = vpack.c.bf16 %v617_v53, %v617_v53 }
 0x419   :  { %v674_v44 = vsel %vm319_vm2, %v667_v4, %v666_v8 }
 0x41a   :  { %v629_v21 = vadd.f32 %v628_v30, %v627_v43  ;;  %v634_v32 = vadd.f32 %v633_v57, %v632_v0  ;;  %v624_v59 = vadd.f32 %v623_v1, %v622_v50  ;;  %v670_v18 = vunpack.c.l.b16 %v643_v3 }
 0x41b   :  { %v675_v22 = vsel %vm321_vm3, %v668_v38, %v674_v44 }
 0x41c   :  { %v630_v31 = vrot.slane %v629_v21, 1  ;;  %v635_v2 = vrot.slane %v634_v32, 2  ;;  %v644_v6 = vpack.c.bf16 %v624_v59, %v624_v59  ;;  %v676_v27 = vsel %vm323_vm4, %v669_v10, %v675_v22 }
 0x41d   :  { %v677_v46 = vsel %vm325_vm5, %v670_v18, %v676_v27 }
 0x41e   :  { %v631_v7 = vadd.f32 %v630_v31, %v629_v21  ;;  %v636_v26 = vadd.f32 %v635_v2, %v634_v32  ;;  %v671_v19 = vunpack.c.l.b16 %v644_v6 }
 0x420   :  { %v645_v13 = vpack.c.bf16 %v631_v7, %v631_v7  ;;  %v637_v15 = vrot.slane %v636_v26, 1  ;;  %v678_v47 = vsel %vm327_vm6, %v671_v19, %v677_v46 }
 0x422   :  { %v638_v20 = vadd.f32 %v637_v15, %v636_v26  ;;  %v672_v23 = vunpack.c.l.b16 %v645_v13 }
 0x424   :  { %v646_v25 = vpack.c.bf16 %v638_v20, %v638_v20  ;;  %v679_v48 = vsel %vm329_vm7, %v672_v23, %v678_v47 }
 0x426   :  { %v673_v35 = vunpack.c.l.b16 %v646_v25 }
 0x428   :  { %v680_v37 = vsel %vm331_vm8, %v673_v35, %v679_v48 }
 0x429   :  { %v681_v52 = vpack.c.b16 %v680_v37, %v680_v37 }
 0x42b   :  { %856 = vmatmul.mubr.msk.bf16.vlgmr.msra.gmra.mrb[0].mxu1 %vm252_vm1, %v681_v52 }
 0x4fe   :  { %v731_v55 = vpop.f32.mrb[0].mxu1 }
 0x4ff   :  { %v732_v16 = vadd.f32 %v796_v36, %v731_v55  ;;  %v857_v39 = vpop.f32.mrb[1].mxu1 }
 0x500   :  { %v734_v63 = vpop.f32.mrb[2].mxu1 }
 0x501   :  { %737 = vst.msk [vmem:[%s1232_s6] sm:$0xff] %vm252_vm1, %v732_v16  ;;  %v858_v17 = vpop.f32.mrb[3].mxu1 }

</bundles_post_ra>
